<compile_context>
chip_gen: v7x
topology: tpu7x:2x2x1
jax: 0.10.0
libtpu: 0.0.40
codegen_flags: <defaults>
</compile_context>

<pallas_src>
import functools

import jax
import jax.numpy as jnp
from jax.experimental import pallas as pl
from jax.experimental.pallas import tpu as pltpu


def _round_up(v: int, m: int) -> int:
    return -(-v // m) * m


def _topmodel_kernel(x_ref, wt_ref, b_ref, o_ref, *, apply_softmax: bool):
    # x_ref: (bt, 25)  wt_ref: (25, 2)  b_ref: (1, 2)  o_ref: (bt, 2)
    x = x_ref[...]
    # Linear: y = x @ W^T + b. K=25 / N=2 is a poor MXU shape, but the kernel is
    # HBM-bound (~108 B moved per ~100 flops per row), so the matmul hides under the
    # x-tile DMA; we deliberately do NOT pad K/N up to 128/256.
    y = jnp.dot(x, wt_ref[...], preferred_element_type=jnp.float32) + b_ref[...]
    if apply_softmax:
        # 2-class softmax == column-wise sigmoid of the pairwise logit difference:
        #   p1 = sigmoid(y1 - y0), p0 = sigmoid(y0 - y1).
        # Avoids cross-lane max/sum reduces; both sigmoids ride the otherwise-idle
        # EUP slot, and sigmoid(-d) keeps full relative precision for column 0.
        d = y[:, 1:2] - y[:, 0:1]                              # (bt, 1)
        y = jax.nn.sigmoid(jnp.concatenate([-d, d], axis=-1))  # (bt, 2)
    o_ref[...] = y.astype(o_ref.dtype)


def top_model_forward(x, weight, bias, phase: str = "train", block_b: int = 8192):
    """Pallas implementation of TopModel.forward.

    x:      (B, 25) float32
    weight: (2, 25) float32   (PyTorch nn.Linear weight layout)
    bias:   (2,)    float32
    """
    B, F_in = x.shape
    F_out = weight.shape[0]
    wt = weight.T                      # (25, 2) — glue transpose outside the kernel
    b2d = bias.reshape(1, F_out)       # (1, 2)

    # Batch tile selection:
    #  * multiple of 8 (sublane granularity, keeps the (8,128) block rule happy),
    #  * at least 2 grid steps whenever B > 8 so the "parallel" batch axis can be
    #    sharded across both TensorCores on v7x (no effect on single-TC v5e/v6e),
    #  * capped at block_b (default 8192) so per-step DMA clearly amortizes the
    #    ~0.35 us fixed per-grid-step pipeline overhead.
    if B <= 8:
        bt = B                                            # single full-extent block
    else:
        bt = min(block_b, _round_up(pl.cdiv(B, 2), 8))
    grid = (pl.cdiv(B, bt),)

    # VMEM budget: x and out blocks both lane-pad their minor dim to 128, so each
    # double-buffered pair costs 2 * bt * 512 B. Size the scoped-VMEM limit from the
    # actual need + headroom, capped at 48 MiB (v7x physical VMEM is 64 MiB); this also
    # lifts v5e's 16 MiB default scoped limit when bt >= 8192.
    block_bytes = bt * 128 * 4
    vmem_limit = min(48 * 1024 * 1024, 4 * block_bytes + 8 * 1024 * 1024)

    kernel = functools.partial(_topmodel_kernel, apply_softmax=(phase == "eval"))

    cost = pl.CostEstimate(
        flops=2 * B * F_in * F_out,
        transcendentals=2 * B if phase == "eval" else 0,
        bytes_accessed=B * F_in * 4 + B * F_out * 4 + F_in * F_out * 4 + F_out * 4,
    )

    return pl.pallas_call(
        kernel,
        out_shape=jax.ShapeDtypeStruct((B, F_out), jnp.float32),
        grid=grid,
        in_specs=[
            pl.BlockSpec((bt, F_in), lambda i: (i, 0)),      # batch-tiled activations
            pl.BlockSpec((F_in, F_out), lambda i: (0, 0)),   # weight resident across steps
            pl.BlockSpec((1, F_out), lambda i: (0, 0)),      # bias resident across steps
        ],
        out_specs=pl.BlockSpec((bt, F_out), lambda i: (i, 0)),
        compiler_params=pltpu.CompilerParams(
            dimension_semantics=("parallel",),
            vmem_limit_bytes=vmem_limit,
        ),
        cost_estimate=cost,
    )(x, wt, b2d)
    # TODO(synk): the (B, 2) output keeps nn.Linear semantics but is lane-sparse
    # (bt/8 masked vst.msk per tile and a 128-lane-padded out VMEM block). If the
    # consumer can accept a (2, B) layout (or just p1 in eval), switch out_specs to
    # BlockSpec((F_out, bt), lambda i: (0, i)) and emit the transposed result for
    # ~16x fewer, unmasked stores and a 16x smaller out block.


if __name__ == "__main__":
    key = jax.random.PRNGKey(0)
    k_x, k_w, k_b, k_x2 = jax.random.split(key, 4)

    F_in, F_out = 25, 2

    # Deterministic parameter init mimicking nn.Linear's default:
    # uniform(-1/sqrt(in_features), 1/sqrt(in_features))
    bound = 1.0 / (F_in ** 0.5)
    weight = jax.random.uniform(k_w, (F_out, F_in), jnp.float32, -bound, bound)
    bias = jax.random.uniform(k_b, (F_out,), jnp.float32, -bound, bound)

    # Small case: single full-extent block, grid=(1,).
    B = 8
    x = jax.random.normal(k_x, (B, F_in), jnp.float32)
    y_train = top_model_forward(x, weight, bias, phase="train")
    y_eval = top_model_forward(x, weight, bias, phase="eval")
    jax.block_until_ready((y_train, y_eval))

    ref_logits = x @ weight.T + bias
    ref_probs = jax.nn.softmax(ref_logits, axis=-1)
    assert jnp.allclose(y_train, ref_logits, atol=1e-5), "logits mismatch"
    assert jnp.allclose(y_eval, ref_probs, atol=1e-4), "softmax mismatch"
    assert jnp.allclose(jnp.sum(y_eval, axis=-1), 1.0, atol=1e-5)

    # Medium case: default tile selection gives 2 grid steps (v7x two-TC path) with a
    # partial last tile; also exercise an explicit small block_b (3 steps).
    B2 = 300
    x2 = jax.random.normal(k_x2, (B2, F_in), jnp.float32)
    y2_train = top_model_forward(x2, weight, bias, phase="train")
    y2_eval = top_model_forward(x2, weight, bias, phase="eval")
    y2_small = top_model_forward(x2, weight, bias, phase="train", block_b=128)
    jax.block_until_ready((y2_train, y2_eval, y2_small))

    ref2_logits = x2 @ weight.T + bias
    ref2_probs = jax.nn.softmax(ref2_logits, axis=-1)
    assert jnp.allclose(y2_train, ref2_logits, atol=1e-5), "tiled logits mismatch"
    assert jnp.allclose(y2_eval, ref2_probs, atol=1e-4), "tiled softmax mismatch"
    assert jnp.allclose(y2_small, ref2_logits, atol=1e-5), "small-tile logits mismatch"

    print("KERNEL_OK")
</pallas_src>

<mosaic_0001>
module attributes {stable_mosaic.version = 11 : i64} {
  func.func @_topmodel_kernel(%arg0: i32, %arg1: memref<8x25xf32, #tpu.memory_space<vmem>>, %arg2: memref<25x2xf32, #tpu.memory_space<vmem>>, %arg3: memref<1x2xf32, #tpu.memory_space<vmem>>, %arg4: memref<8x2xf32, #tpu.memory_space<vmem>>) attributes {dimension_semantics = [#tpu.dimension_semantics<parallel>], iteration_bounds = array<i64: 1>, scalar_prefetch = 0 : i64, scratch_operands = 0 : i64, tpu.core_type = #tpu.core_type<tc>, window_params = [{transform_indices = @transform_0, window_bounds = array<i64: 8, 25>}, {pipeline_mode = #tpu.pipeline_mode<synchronous>, transform_indices = @transform_1, window_bounds = array<i64: 25, 2>}, {pipeline_mode = #tpu.pipeline_mode<synchronous>, transform_indices = @transform_2, window_bounds = array<i64: 1, 2>}, {transform_indices = @transform_3, window_bounds = array<i64: 8, 2>}]} {
    %c0 = arith.constant 0 : index
    %c0_0 = arith.constant 0 : index
    %0 = vector.load %arg1[%c0, %c0_0] : memref<8x25xf32, #tpu.memory_space<vmem>>, vector<8x25xf32>
    %c0_1 = arith.constant 0 : index
    %c0_2 = arith.constant 0 : index
    %1 = vector.load %arg2[%c0_1, %c0_2] : memref<25x2xf32, #tpu.memory_space<vmem>>, vector<25x2xf32>
    %cst = arith.constant dense<0.000000e+00> : vector<8x2xf32>
    %2 = tpu.matmul %0, %1, %cst {dimension_numbers = #tpu.dot_dimension_numbers<[1], [0], [0], [1], [0, 0, 1, 1], [], []>} : vector<8x25xf32>, vector<25x2xf32>, vector<8x2xf32> -> vector<8x2xf32>
    %c0_3 = arith.constant 0 : index
    %c0_4 = arith.constant 0 : index
    %3 = vector.load %arg3[%c0_3, %c0_4] : memref<1x2xf32, #tpu.memory_space<vmem>>, vector<1x2xf32>
    %4 = vector.broadcast %3 : vector<1x2xf32> to vector<8x2xf32>
    %5 = arith.addf %2, %4 : vector<8x2xf32>
    %c0_5 = arith.constant 0 : index
    %c0_6 = arith.constant 0 : index
    %6 = vector.load %arg4[%c0_5, %c0_6] : memref<8x2xf32, #tpu.memory_space<vmem>>, vector<8x2xf32>
    tpu.vector_store %arg4[%c0_5, %c0_6], %5 {strides = array<i32>} : memref<8x2xf32, #tpu.memory_space<vmem>>, vector<8x2xf32>,
    return
  }
  func.func @transform_0(%arg0: i32) -> (i32, i32) {
    %c0_i32 = arith.constant 0 : i32
    %c0_i32_0 = arith.constant 0 : i32
    return %arg0, %c0_i32 : i32, i32
  }
  func.func @transform_1(%arg0: i32) -> (i32, i32) {
    %c0_i32 = arith.constant 0 : i32
    %c0_i32_0 = arith.constant 0 : i32
    %c0_i32_1 = arith.constant 0 : i32
    return %c0_i32, %c0_i32_0 : i32, i32
  }
  func.func @transform_2(%arg0: i32) -> (i32, i32) {
    %c0_i32 = arith.constant 0 : i32
    %c0_i32_0 = arith.constant 0 : i32
    %c0_i32_1 = arith.constant 0 : i32
    return %c0_i32, %c0_i32_0 : i32, i32
  }
  func.func @transform_3(%arg0: i32) -> (i32, i32) {
    %c0_i32 = arith.constant 0 : i32
    %c0_i32_0 = arith.constant 0 : i32
    return %arg0, %c0_i32 : i32, i32
  }
}

</mosaic_0001>

<bundles_post_ra>
// kernel: tpu_custom_call.1
= control target key start
LH: loop header
LB: loop body
LE: loop exit
PB: predicated region body
PF: predicated region fallthrough
CT: control target
= control target key end

     0   :  { %v140_v0 = vmov 0.0|0.0   ;;  %vm30_vm0 = vcmask 1040384   ;;  %vm141_vm1 = vmmov 0   ;;  %v142_v6 = vmov 0.0   ;;  %s185_s1 = inlined_call_operand.vmem [shape: f32[25,2], index: 1, kind: input, shape index: {}]   ;;  %s186_s0 = inlined_call_operand.vmem [shape: f32[8,25], index: 0, kind: input, shape index: {}]   ;;  %s187_s2 = inlined_call_operand.vmem [shape: f32[1,2], index: 2, kind: input, shape index: {}]   ;;  %s188_s3 = inlined_call_operand.vmem [shape: f32[8,2], index: 3, kind: output, shape index: {}]  }
   0x1   :  { %129 = vmatprep.subr.bf16.mxu0 %v140_v0  ;;  %v15_v1 = vld [vmem:[%s185_s1] sm:$0xff]  ;;  %v16_v2 = vld [vmem:[%s185_s1 + $0x8] sm:$0xff]  ;;  %v17_v3 = vld [vmem:[%s185_s1 + $0x10] sm:$0xff]  ;;  %126 = vmatprep.mubr.msk.f32.mxu0 %vm141_vm1, %v142_v6  ;;  %vm143_vm2 = vmmov 1   ;;  %vm26_vm4 = vcmask 203776   ;;  %vm104_vm5 = vcmask 15360  }
   0x2   :  { %v130_v4 = vpack.c.bf16 %v16_v2, %v15_v1  ;;  %v18_v5 = vld [vmem:[%s185_s1 + $0x18] sm:$0x1]  ;;  %vm134_vm3 = vmpackc.low %vm30_vm0, %vm143_vm2  ;;  %v14_v8 = vld [vmem:[%s186_s0] sm:$0xff] }
   0x3   :  { %v133_v7 = vpack.c.bf16 %v18_v5, %v17_v3  ;;  %v110_v9 = vld [vmem:[%s187_s2] ss:$0 sm:$0xff] }
   0x4   :  { %131 = vmatpush3.bf16.msra.mxu0 %v130_v4 }
   0x5   :  { %132 = vmatprep.subr.bf16.mxu0 %v140_v0 }
   0x8   :  { %135 = vmatpush3.bf16.msk.msra.mxu0 %vm134_vm3, %v133_v7 }
   0xb   :  { %127 = vmatmul.mubr.msk.f32.vlgmr.msra.gmra.mrb[0].mxu0 %vm26_vm4, %v14_v8 }
  0xde   :  { %v100_v10 = vpop.f32.mrb[0].mxu0 }
  0xdf   :  { %v101_v11 = vadd.f32 %v110_v9, %v100_v10  ;;  %v128_v12 = vpop.f32.mrb[1].mxu0 }
  0xe1   :  { %105 = vst.msk [vmem:[%s188_s3] sm:$0xff] %vm104_vm5, %v101_v11 }

</bundles_post_ra>
